<compile_context>
chip_gen: v7x
topology: tpu7x:2x2x1
jax: 0.10.0
libtpu: 0.0.40
codegen_flags: <defaults>
</compile_context>

<pallas_src>
import jax
import jax.numpy as jnp
from jax.experimental import pallas as pl
from jax.experimental.pallas import tpu as pltpu


def pooler_kernel(x_ref, w_ref, b_ref, o_ref):
    # x_ref: (TB, D)  first-token activations
    # w_ref: (TN, D)  row-block of the PyTorch-layout (D_out, D_in) weight
    # b_ref: (1, TN)  bias slice
    x = x_ref[...]
    w = w_ref[...]
    # y = x @ w.T, accumulated in f32 on the MXU; no transpose is materialized
    # in HBM and no wrapper-side copy is made.
    y = jax.lax.dot_general(
        x, w,
        dimension_numbers=(((1,), (1,)), ((), ())),
        preferred_element_type=jnp.float32,
    )
    y = y + b_ref[...].astype(jnp.float32)
    o_ref[...] = jnp.maximum(y, 0.0).astype(o_ref.dtype)


def _aligned_divisors(dim, align):
    """Divisors of `dim` that are multiples of `align` (plus `dim`), descending."""
    cands = {dim}
    t = align
    while t < dim:
        if dim % t == 0:
            cands.add(t)
        t += align
    return sorted(cands, reverse=True)


def simple_pooler(hidden_states, weight, bias):
    """hidden_states: (B, S, D); weight: (D, D) PyTorch (out,in) layout; bias: (D,)."""
    B, S, D = hidden_states.shape
    out_dtype = hidden_states.dtype

    x_bytes = jnp.dtype(hidden_states.dtype).itemsize
    w_bytes = jnp.dtype(weight.dtype).itemsize
    b_bytes = jnp.dtype(bias.dtype).itemsize
    o_bytes = jnp.dtype(out_dtype).itemsize

    # Generation-aware VMEM capacity (v7x: 64 MiB/TC, v5e/v6e: 128 MiB) with
    # 25% headroom for Mosaic internal scratch.
    try:
        vmem_cap = int(getattr(pltpu.get_tpu_info(), "vmem_capacity_bytes",
                               64 * 1024 * 1024))
    except Exception:  # conservative default if query unavailable
        vmem_cap = 64 * 1024 * 1024
    vmem_budget = (vmem_cap * 3) // 4

    def _vmem(tb, tn):
        # Joint budget: double-buffered activation, weight, bias and output tiles.
        return 2 * (tb * D * x_bytes + tn * D * w_bytes
                    + tn * b_bytes + tb * tn * o_bytes)

    min_tn = 128 if D % 128 == 0 else D

    # --- Batch tile: prefer TB == B so the D^2 weight is streamed exactly once.
    tb_cands = _aligned_divisors(B, 8) if B % 8 == 0 else [B]
    TB = tb_cands[-1]
    for tb in tb_cands:
        if _vmem(tb, min_tn) <= vmem_budget:
            TB = tb
            break

    # --- Output-dim tile: largest lane-aligned divisor that fits jointly.
    tn_cands = _aligned_divisors(D, 128) if D % 128 == 0 else [D]
    TN = tn_cands[-1]
    for tn in tn_cands:
        if _vmem(TB, tn) <= vmem_budget:
            TN = tn
            break

    # --- Megacore (v7x): guarantee >= 2 grid points on a parallel axis when
    # the problem allows it without breaking (8, 128) alignment.
    if (B // TB) == 1 and (D // TN) == 1:
        if D % 256 == 0:
            TN = D // 2
        elif B % 16 == 0:
            TB = B // 2
        # else: too small to split with aligned tiles; single grid point.

    bt = B // TB
    nt = D // TN

    # Grid ordering: if the batch must be tiled, put the weight-tile axis on
    # the OUTER (slow) grid dim so each (TN, D) weight block stays resident in
    # VMEM across the inner batch sweep -> weight HBM traffic is D^2 bytes
    # total, not (B/TB) * D^2.
    if bt > 1:
        grid = (nt, bt)
        x_map = lambda j, i: (i, 0)
        w_map = lambda j, i: (j, 0)
        b_map = lambda j, i: (0, j)
        o_map = lambda j, i: (i, j)
    else:
        grid = (bt, nt)
        x_map = lambda i, j: (i, 0)
        w_map = lambda i, j: (j, 0)
        b_map = lambda i, j: (0, j)
        o_map = lambda i, j: (i, j)

    # Fused first-token gather: collapsing (B, S, D) -> (B, S*D) is a free
    # bitcast reshape; the activation BlockSpec then DMAs only columns [0, D)
    # of each row (token 0) straight from HBM.
    if D % 128 == 0 or S == 1:
        x_in = hidden_states.reshape(B, S * D)
    else:
        # TODO(synk): non-lane-aligned D falls back to a wrapper slice (one
        # extra B*D HBM round trip) to satisfy Mosaic's last-dim constraint.
        x_in = hidden_states[:, 0, :]

    # TODO(synk): dropout is identity at inference; no stochastic mask applied.
    b2 = bias.reshape(1, D)

    vmem_needed = _vmem(TB, TN)
    # Never clamp below what the chosen tiles need; never exceed physical VMEM.
    vmem_limit = int(min(max(vmem_needed + (4 << 20), 16 << 20), vmem_cap))

    return pl.pallas_call(
        pooler_kernel,
        out_shape=jax.ShapeDtypeStruct((B, D), out_dtype),
        grid_spec=pltpu.PrefetchScalarGridSpec(
            num_scalar_prefetch=0,
            grid=grid,
            in_specs=[
                pl.BlockSpec((TB, D), x_map),   # first-token rows (token-0 slab)
                pl.BlockSpec((TN, D), w_map),   # weight row block, PyTorch layout
                pl.BlockSpec((1, TN), b_map),   # bias slice
            ],
            out_specs=pl.BlockSpec((TB, TN), o_map),
        ),
        compiler_params=pltpu.CompilerParams(
            dimension_semantics=("parallel", "parallel"),
            vmem_limit_bytes=vmem_limit,
        ),
    )(x_in, weight, b2)


if __name__ == "__main__":
    # Small, lane-aligned shapes consistent with the module: batch=8, seq=8, d_model=128.
    B, S, D = 8, 8, 128
    key = jax.random.PRNGKey(0)
    k_x, k_w, k_b = jax.random.split(key, 3)

    hidden_states = jax.random.normal(k_x, (B, S, D), dtype=jnp.float32)
    # Deterministic parameter init (Linear(D, D)): weight (D_out, D_in), bias (D,)
    weight = jax.random.normal(k_w, (D, D), dtype=jnp.float32) * (1.0 / jnp.sqrt(D))
    bias = jax.random.normal(k_b, (D,), dtype=jnp.float32) * 0.01

    out = jax.block_until_ready(simple_pooler(hidden_states, weight, bias))

    # Reference check in plain JAX.
    ref = jnp.maximum(hidden_states[:, 0, :] @ weight.T + bias, 0.0)
    assert out.shape == (B, D)
    assert jnp.allclose(out, ref, atol=1e-4, rtol=1e-4), float(jnp.max(jnp.abs(out - ref)))

    print("KERNEL_OK")
</pallas_src>

<mosaic_0001>
module attributes {stable_mosaic.version = 11 : i64} {
  func.func @pooler_kernel(%arg0: i32, %arg1: i32, %arg2: memref<8x128xf32, #tpu.memory_space<vmem>>, %arg3: memref<128x128xf32, #tpu.memory_space<vmem>>, %arg4: memref<1x128xf32, #tpu.memory_space<vmem>>, %arg5: memref<8x128xf32, #tpu.memory_space<vmem>>) attributes {dimension_semantics = [#tpu.dimension_semantics<parallel>, #tpu.dimension_semantics<parallel>], iteration_bounds = array<i64: 1, 1>, scalar_prefetch = 0 : i64, scratch_operands = 0 : i64, tpu.core_type = #tpu.core_type<tc>, window_params = [{transform_indices = @transform_0, window_bounds = array<i64: 8, 128>}, {transform_indices = @transform_1, window_bounds = array<i64: 128, 128>}, {transform_indices = @transform_2, window_bounds = array<i64: 1, 128>}, {transform_indices = @transform_3, window_bounds = array<i64: 8, 128>}]} {
    %c0 = arith.constant 0 : index
    %c0_0 = arith.constant 0 : index
    %0 = vector.load %arg2[%c0, %c0_0] : memref<8x128xf32, #tpu.memory_space<vmem>>, vector<8x128xf32>
    %c0_1 = arith.constant 0 : index
    %c0_2 = arith.constant 0 : index
    %1 = vector.load %arg3[%c0_1, %c0_2] : memref<128x128xf32, #tpu.memory_space<vmem>>, vector<128x128xf32>
    %cst = arith.constant dense<0.000000e+00> : vector<8x128xf32>
    %2 = tpu.matmul %0, %1, %cst {dimension_numbers = #tpu.dot_dimension_numbers<[1], [1], [0], [0], [0, 0, 1, 0], [], []>} : vector<8x128xf32>, vector<128x128xf32>, vector<8x128xf32> -> vector<8x128xf32>
    %c0_3 = arith.constant 0 : index
    %c0_4 = arith.constant 0 : index
    %3 = vector.load %arg4[%c0_3, %c0_4] : memref<1x128xf32, #tpu.memory_space<vmem>>, vector<1x128xf32>
    %4 = vector.broadcast %3 : vector<1x128xf32> to vector<8x128xf32>
    %5 = arith.addf %2, %4 : vector<8x128xf32>
    %cst_5 = arith.constant 0.000000e+00 : f32
    %6 = vector.broadcast %cst_5 : f32 to vector<8x128xf32>
    %7 = arith.maximumf %5, %6 : vector<8x128xf32>
    %c0_6 = arith.constant 0 : index
    %c0_7 = arith.constant 0 : index
    %8 = vector.load %arg5[%c0_6, %c0_7] : memref<8x128xf32, #tpu.memory_space<vmem>>, vector<8x128xf32>
    tpu.vector_store %arg5[%c0_6, %c0_7], %7 {strides = array<i32>} : memref<8x128xf32, #tpu.memory_space<vmem>>, vector<8x128xf32>,
    return
  }
  func.func @transform_0(%arg0: i32, %arg1: i32) -> (i32, i32) {
    %c0_i32 = arith.constant 0 : i32
    %c0_i32_0 = arith.constant 0 : i32
    return %arg0, %c0_i32 : i32, i32
  }
  func.func @transform_1(%arg0: i32, %arg1: i32) -> (i32, i32) {
    %c0_i32 = arith.constant 0 : i32
    %c0_i32_0 = arith.constant 0 : i32
    return %arg1, %c0_i32 : i32, i32
  }
  func.func @transform_2(%arg0: i32, %arg1: i32) -> (i32, i32) {
    %c0_i32 = arith.constant 0 : i32
    %c0_i32_0 = arith.constant 0 : i32
    return %c0_i32, %arg1 : i32, i32
  }
  func.func @transform_3(%arg0: i32, %arg1: i32) -> (i32, i32) {
    %c0_i32 = arith.constant 0 : i32
    return %arg0, %arg1 : i32, i32
  }
}

</mosaic_0001>

<bundles_post_ra>
// kernel: tpu_custom_call.1
= control target key start
LH: loop header
LB: loop body
LE: loop exit
PB: predicated region body
PF: predicated region fallthrough
CT: control target
= control target key end

     0   :  { %8 = vsyncpa [#allocation3], 0  ;;  %s387_s0 = inlined_call_operand.hbm [shape: f32[8,1024], index: 0, kind: input, shape index: {}]   ;;  %s388_s1 = inlined_call_operand.hbm [shape: f32[128,128], index: 1, kind: input, shape index: {}]   ;;  %s389_s2 = inlined_call_operand.vmem [shape: f32[1,128], index: 2, kind: input, shape index: {}]   ;;  %s390_s3 = inlined_call_operand.hbm [shape: f32[8,128], index: 3, kind: output, shape index: {}]  }
   0x1   :  { %9 = vsyncpa [#allocation6], 0 }
   0x2   :  { %10 = vsyncpa [#allocation4], 0  ;;  %s310_s12 = smov [#allocation2]   ;;  %s311_s14 = smov [#allocation5]  }
   0x3   :  { %s17_s13 = sshll.u32 %s310_s12, 4  ;;  %s26_s15 = sshll.u32 %s311_s14, 4  ;;  %s18_s13 = int_to_ptr.vmem [resolvable:$true] %s17_s13  ;;  %s338_s15 = int_to_ptr.vmem [resolvable:$true] %s26_s15 }
   0x4   :  { %s238_s18 = scalar_lea.hbm %s387_s0, 128  ;;  %s240_s23 = scalar_lea.hbm %s387_s0, 1024 }
   0x5   :  { %p239_p0 = scmp.ne.s32.totalorder %s387_s0, %s238_s18  ;;  %p241_p1 = scmp.lt.u32.totalorder %s240_s23, %s238_s18 }
   0x6   :  { %p242_p2 = scmp.lt.u32.totalorder %s238_s18, %s387_s0 }
   0x8   :  { %p243_p3 = por %p242_p2, %p241_p1 }
   0xa   :  { %p244_p4 = pnand %p243_p3, %p239_p0 }
   0xc   :  { %247 = shalt.err (!%p244_p4)
}
   0xd   :  { %s248_s26 = scalar_lea.vmem %s18_s13, 128  ;;  %p253_p6 = scmp.lt.s32.totalorder %s18_s13, %s18_s13 }
   0xe   :  { %p249_p5 = scmp.ne.s32.totalorder %s18_s13, %s248_s26  ;;  %p254_p7 = scmp.lt.s32.totalorder %s248_s26, %s248_s26 }
  0x10   :  { %p255_p8 = por %p254_p7, %p253_p6 }
  0x12   :  { %p256_p9 = pnand %p255_p8, %p249_p5 }
  0x14   :  { %259 = shalt.err (!%p256_p9)
}
  0x15   :  { %20 = dma.hbm_to_vmem [thread:$0]  %s387_s0, 128, %s18_s13, [#allocation3]  }
  0x16   :  { %s260_s4 = scalar_lea.hbm %s388_s1, 2048 }
  0x17   :  { %p261_p10 = scmp.ne.s32.totalorder %s388_s1, %s260_s4  ;;  %p264_p11 = scmp.lt.u32.totalorder %s260_s4, %s388_s1 }
  0x19   :  { %p266_p12 = pnand %p264_p11, %p261_p10 }
  0x1b   :  { %269 = shalt.err (!%p266_p12)
}
  0x1c   :  { %s270_s9 = scalar_lea.vmem %s338_s15, 2048  ;;  %p275_p0 = scmp.lt.s32.totalorder %s338_s15, %s338_s15 }
  0x1d   :  { %p271_p13 = scmp.ne.s32.totalorder %s338_s15, %s270_s9  ;;  %p276_p1 = scmp.lt.s32.totalorder %s270_s9, %s270_s9 }
  0x1f   :  { %p277_p2 = por %p276_p1, %p275_p0 }
  0x21   :  { %p278_p3 = pnand %p277_p2, %p271_p13 }
  0x23   :  { %281 = shalt.err (!%p278_p3)
}
  0x24   :  { %s312_s0 = smov 128   ;;  %s313_s10 = smov 8  }
  0x25   :  { %32 = dma.hbm_to_vmem [thread:$0]  %s388_s1, 2048, %s338_s15, [#allocation6], %s312_s0, %s312_s0, %s313_s10  }
  0x26   :  { %304 = dma.done.wait [#allocation3], 128  }
  0x27   :  { %305 = vsyncadd [#allocation3], 4294967168 }
  0x28   :  { %306 = dma.done.wait [#allocation6], 2048  }
  0x29   :  { %307 = vsyncadd [#allocation6], 4294965248  ;;  %v314_v0 = vmov 0.0|0.0   ;;  %vm315_vm0 = vmmov 0   ;;  %v316_v1 = vmov 0.0   ;;  %v42_v2 = vld [vmem:[#allocation5] sm:$0xff] }
  0x2a   :  { %206 = vmatprep.subr.bf16.mxu0 %v314_v0  ;;  %203 = vmatprep.mubr.msk.f32.mxu0 %vm315_vm0, %v316_v1  ;;  %v43_v3 = vld [vmem:[#allocation5 + $0x8] sm:$0xff]  ;;  %v44_v5 = vld [vmem:[#allocation5 + $0x10] sm:$0xff]  ;;  %v45_v6 = vld [vmem:[#allocation5 + $0x18] sm:$0xff]  ;;  %s317_s14 = smov [#allocation7]  }
  0x2b   :  { %v207_v4 = vpack.c.bf16 %v43_v3, %v42_v2  ;;  %v210_v7 = vpack.c.bf16 %v45_v6, %v44_v5  ;;  %v46_v8 = vld [vmem:[#allocation5 + $0x20] sm:$0xff]  ;;  %v47_v9 = vld [vmem:[#allocation5 + $0x28] sm:$0xff]  ;;  %v48_v11 = vld [vmem:[#allocation5 + $0x30] sm:$0xff]  ;;  %s143_s15 = sshll.u32 %s317_s14, 4  ;;  %s144_s15 = int_to_ptr.vmem [resolvable:$true] %s143_s15 }
  0x2c   :  { %v213_v10 = vpack.c.bf16 %v47_v9, %v46_v8  ;;  %v49_v12 = vld [vmem:[#allocation5 + $0x38] sm:$0xff]  ;;  %v50_v14 = vld [vmem:[#allocation5 + $0x40] sm:$0xff]  ;;  %v51_v15 = vld [vmem:[#allocation5 + $0x48] sm:$0xff]  ;;  %s282_s16 = scalar_lea.vmem %s144_s15, 128  ;;  %p287_p5 = scmp.lt.s32.totalorder %s144_s15, %s144_s15 }
  0x2d   :  { %208 = vmatpush3.bf16.xpose.msra.mxu0 %v207_v4  ;;  %v216_v13 = vpack.c.bf16 %v49_v12, %v48_v11  ;;  %v219_v16 = vpack.c.bf16 %v51_v15, %v50_v14  ;;  %v52_v17 = vld [vmem:[#allocation5 + $0x50] sm:$0xff]  ;;  %v53_v18 = vld [vmem:[#allocation5 + $0x58] sm:$0xff]  ;;  %v54_v20 = vld [vmem:[#allocation5 + $0x60] sm:$0xff]  ;;  %p283_p4 = scmp.ne.s32.totalorder %s144_s15, %s282_s16  ;;  %p288_p6 = scmp.lt.s32.totalorder %s282_s16, %s282_s16 }
  0x2e   :  { %209 = vmatprep.subr.bf16.mxu0 %v314_v0  ;;  %v222_v19 = vpack.c.bf16 %v53_v18, %v52_v17  ;;  %v55_v21 = vld [vmem:[#allocation5 + $0x68] sm:$0xff]  ;;  %v56_v23 = vld [vmem:[#allocation5 + $0x70] sm:$0xff]  ;;  %v57_v24 = vld [vmem:[#allocation5 + $0x78] sm:$0xff] }
  0x2f   :  { %v225_v22 = vpack.c.bf16 %v55_v21, %v54_v20  ;;  %v228_v25 = vpack.c.bf16 %v57_v24, %v56_v23  ;;  %v41_v26 = vld [vmem:[#allocation2] sm:$0xff]  ;;  %p289_p7 = por %p288_p6, %p287_p5 }
  0x30   :  { %v153_v27 = vld [vmem:[%s389_s2] ss:$0 sm:$0xff] }
  0x31   :  { %p290_p8 = pnand %p289_p7, %p283_p4 }
  0x35   :  { %211 = vmatpush3.bf16.xpose.msra.mxu0 %v210_v7 }
  0x36   :  { %212 = vmatprep.subr.bf16.mxu0 %v314_v0 }
  0x3d   :  { %214 = vmatpush3.bf16.xpose.msra.mxu0 %v213_v10 }
  0x3e   :  { %215 = vmatprep.subr.bf16.mxu0 %v314_v0 }
  0x45   :  { %217 = vmatpush3.bf16.xpose.msra.mxu0 %v216_v13 }
  0x46   :  { %218 = vmatprep.subr.bf16.mxu0 %v314_v0 }
  0x4d   :  { %220 = vmatpush3.bf16.xpose.msra.mxu0 %v219_v16 }
  0x4e   :  { %221 = vmatprep.subr.bf16.mxu0 %v314_v0 }
  0x55   :  { %223 = vmatpush3.bf16.xpose.msra.mxu0 %v222_v19 }
  0x56   :  { %224 = vmatprep.subr.bf16.mxu0 %v314_v0 }
  0x5d   :  { %226 = vmatpush3.bf16.xpose.msra.mxu0 %v225_v22 }
  0x5e   :  { %227 = vmatprep.subr.bf16.mxu0 %v314_v0 }
  0x65   :  { %229 = vmatpush3.bf16.xpose.msra.mxu0 %v228_v25 }
  0x6c   :  { %204 = vmatmul.mubr.f32.vlgmr.msra.gmra.mrb[0].mxu0 %v41_v26 }
 0x13f   :  { %v131_v28 = vpop.f32.mrb[0].mxu0 }
 0x140   :  { %v132_v29 = vadd.f32 %v153_v27, %v131_v28  ;;  %v205_v30 = vpop.f32.mrb[1].mxu0 }
 0x142   :  { %v135_v31 = vmax.f32 %v132_v29, 0.0 }
 0x144   :  { %136 = vst [vmem:[#allocation7] sm:$0xff] %v135_v31 }
 0x145   :  { %293 = shalt.err (!%p290_p8)
}
 0x146   :  { %s294_s19 = scalar_lea.hbm %s390_s3, 128 }
 0x147   :  { %p295_p9 = scmp.ne.s32.totalorder %s390_s3, %s294_s19  ;;  %p298_p10 = scmp.lt.u32.totalorder %s294_s19, %s390_s3 }
 0x149   :  { %p300_p11 = pnand %p298_p10, %p295_p9 }
 0x14b   :  { %303 = shalt.err (!%p300_p11)
}
 0x14c   :  { %146 = dma.vmem_to_hbm [thread:$0]  %s144_s15, 128, %s390_s3, [#allocation4]  }
 0x14d   :  { %308 = dma.done.wait [#allocation4], 128  }
 0x14e   :  { %309 = vsyncadd [#allocation4], 4294967168 }
 0x14f   :  { %150 = vsyncpa [#allocation3], 1 }
 0x150   :  { %151 = vsyncpa [#allocation6], 1 }
 0x151   :  { %152 = vsyncpa [#allocation4], 1 }

</bundles_post_ra>
